<compile_context>
chip_gen: v7x
topology: tpu7x:2x2x1
jax: 0.10.0
libtpu: 0.0.40
codegen_flags: <defaults>
</compile_context>

<pallas_src>
import functools

import jax
import jax.numpy as jnp
from jax import lax
from jax.experimental import pallas as pl
from jax.experimental.pallas import tpu as pltpu

LANE = 128          # TPU lane width (last dim)
SUBLANE = 8         # TPU sublane width (second-to-last dim)
PROBS_OFFSET = 64   # lane offset of the probs band inside the packed output


def _round_up(n: int, m: int) -> int:
    return ((n + m - 1) // m) * m


def actor_kernel(x_ref, w1_ref, b1_ref, w2_ref, b2_ref, w3_ref, b3_ref,
                 out_ref, *, action_dim: int, probs_offset: int):
    x = x_ref[...]                                           # (tb, state_dim)

    # Layer 1: Linear + Tanh   (K = state_dim = 16, N = hidden = 64)
    h1 = jnp.tanh(
        jnp.dot(x, w1_ref[...], preferred_element_type=jnp.float32) + b1_ref[...])

    # Layer 2: Linear + Tanh   (64 x 64)
    h2 = jnp.tanh(
        jnp.dot(h1, w2_ref[...], preferred_element_type=jnp.float32) + b2_ref[...])

    # Output layer.  w3/b3 columns hold the logits twice: lanes [0, A) and
    # lanes [probs_offset, probs_offset + A); one MXU matmul produces both.
    z = jnp.dot(h2, w3_ref[...], preferred_element_type=jnp.float32) + b3_ref[...]

    lane = lax.broadcasted_iota(jnp.int32, z.shape, dimension=1)
    in_probs_band = (lane >= probs_offset) & (lane < probs_offset + action_dim)

    # Masked softmax over the duplicated-logits band -> probs land in
    # lanes [probs_offset, probs_offset + A), zeros elsewhere.
    masked = jnp.where(in_probs_band, z, -jnp.inf)
    m = jnp.max(masked, axis=-1, keepdims=True)
    e = jnp.where(in_probs_band, jnp.exp(masked - m), 0.0)
    denom = jnp.sum(e, axis=-1, keepdims=True)
    probs = e / denom            # exact divide: probs must sum to 1 for PG losses

    # Packed lane-dense store: logits in [0, probs_offset), probs above it.
    out_ref[...] = jnp.where(lane < probs_offset, z, probs)


def prepare_params(params):
    """Pad/duplicate the output layer ONCE at init (hoisted out of the forward).

    Returns (padded_params, action_dim).  w1/b1/w2/b2 are kept at their natural
    (state_dim, 64) / (1, 64) shapes — full-dim blocks are legal and keep tanh
    at 64 lanes.  w3/b3 are widened to 128 lanes with the logits columns placed
    twice (logits band + probs band).
    """
    w1, b1, w2, b2, w3, b3 = (jnp.asarray(p, jnp.float32) for p in params)
    hidden_dim = w1.shape[1]
    action_dim = w3.shape[1]
    assert action_dim <= PROBS_OFFSET, (
        "packed single-slab output assumes action_dim <= 64")
    # TODO(synk): fall back to a two-slab output for action_dim > 64.

    b1 = b1.reshape(1, hidden_dim)
    b2 = b2.reshape(1, hidden_dim)
    b3r = b3.reshape(1, action_dim)

    w3p = jnp.zeros((hidden_dim, LANE), jnp.float32)
    w3p = w3p.at[:, :action_dim].set(w3)
    w3p = w3p.at[:, PROBS_OFFSET:PROBS_OFFSET + action_dim].set(w3)

    b3p = jnp.zeros((1, LANE), jnp.float32)
    b3p = b3p.at[:, :action_dim].set(b3r)
    b3p = b3p.at[:, PROBS_OFFSET:PROBS_OFFSET + action_dim].set(b3r)

    return (w1, b1, w2, b2, w3p, b3p), action_dim


def actor_forward(x, padded_params, action_dim, *, tile_batch: int = 2048,
                  interpret: bool = False):
    """Fused actor MLP. Returns (logits, probs), shapes (batch, action_dim)."""
    w1, b1, w2, b2, w3p, b3p = padded_params
    batch, state_dim = x.shape
    hidden_dim = w1.shape[1]

    x = x.astype(jnp.float32)

    # Batch tiling: large tiles amortize the ~0.35 us/step overhead; for
    # batches bigger than one sublane group, cap the tile at ~half the batch so
    # the grid has >= 2 steps and "parallel" can use both v7x TensorCores.
    tb = min(_round_up(tile_batch, SUBLANE), _round_up(batch, SUBLANE))
    if batch > SUBLANE:
        tb = min(tb, _round_up(pl.cdiv(_round_up(batch, SUBLANE), 2), SUBLANE))
    b_pad = _round_up(batch, tb)
    if b_pad != batch:
        x = jnp.pad(x, ((0, b_pad - batch), (0, 0)))   # row pad only (16 lanes/row)

    grid = (b_pad // tb,)

    def resident(shape):   # grid-invariant weights/biases: one block, stays in VMEM
        return pl.BlockSpec(shape, lambda i: (0, 0))

    flops = 2 * b_pad * (state_dim * hidden_dim
                         + hidden_dim * hidden_dim
                         + hidden_dim * LANE)
    transcendentals = b_pad * (2 * hidden_dim + action_dim)        # tanh x2 + exp
    bytes_accessed = 4 * (b_pad * state_dim
                          + state_dim * hidden_dim + hidden_dim
                          + hidden_dim * hidden_dim + hidden_dim
                          + hidden_dim * LANE + LANE
                          + b_pad * LANE)

    packed = pl.pallas_call(
        functools.partial(actor_kernel, action_dim=action_dim,
                          probs_offset=PROBS_OFFSET),
        out_shape=jax.ShapeDtypeStruct((b_pad, LANE), jnp.float32),
        grid=grid,
        in_specs=[
            pl.BlockSpec((tb, state_dim), lambda i: (i, 0)),   # x: full 16-lane rows
            resident((state_dim, hidden_dim)), resident((1, hidden_dim)),
            resident((hidden_dim, hidden_dim)), resident((1, hidden_dim)),
            resident((hidden_dim, LANE)), resident((1, LANE)),
        ],
        out_specs=pl.BlockSpec((tb, LANE), lambda i: (i, 0)),
        compiler_params=pltpu.CompilerParams(
            dimension_semantics=("parallel",),      # batch axis over v7x's 2 TCs
            vmem_limit_bytes=32 * 1024 * 1024,
        ),
        cost_estimate=pl.CostEstimate(
            flops=flops,
            transcendentals=transcendentals,
            bytes_accessed=bytes_accessed,
        ),
        interpret=interpret,
    )(x, w1, b1, w2, b2, w3p, b3p)

    logits = packed[:batch, :action_dim]
    probs = packed[:batch, PROBS_OFFSET:PROBS_OFFSET + action_dim]
    return logits, probs


def init_params(key, state_dim, action_dim, hidden_dim=64):
    """Deterministic init matching torch.nn.Linear defaults (U(-1/sqrt(fan_in), +))."""
    def linear(k, fan_in, fan_out):
        kw, kb = jax.random.split(k)
        bound = 1.0 / jnp.sqrt(fan_in)
        w = jax.random.uniform(kw, (fan_in, fan_out), jnp.float32, -bound, bound)
        b = jax.random.uniform(kb, (1, fan_out), jnp.float32, -bound, bound)
        return w, b

    k1, k2, k3 = jax.random.split(key, 3)
    w1, b1 = linear(k1, state_dim, hidden_dim)
    w2, b2 = linear(k2, hidden_dim, hidden_dim)
    w3, b3 = linear(k3, hidden_dim, action_dim)
    return (w1, b1, w2, b2, w3, b3)


def actor_reference(x, params):
    """Pure-JAX reference for correctness checking."""
    w1, b1, w2, b2, w3, b3 = params
    h1 = jnp.tanh(x @ w1 + b1)
    h2 = jnp.tanh(h1 @ w2 + b2)
    logits = h2 @ w3 + b3.reshape(1, -1)
    probs = jax.nn.softmax(logits, axis=-1)
    return logits, probs


if __name__ == "__main__":
    key = jax.random.PRNGKey(0)
    k_params, k_x1, k_x2 = jax.random.split(key, 3)

    state_dim, action_dim, hidden_dim = 16, 4, 64
    raw_params = init_params(k_params, state_dim, action_dim, hidden_dim)
    padded_params, a_dim = prepare_params(raw_params)   # padded ONCE at init

    # Case 1: small batch (single grid step, tb == 8).
    x_small = jax.random.normal(k_x1, (8, state_dim), dtype=jnp.float32)
    logits, probs = actor_forward(x_small, padded_params, a_dim)
    jax.block_until_ready((logits, probs))
    ref_logits, ref_probs = actor_reference(x_small, raw_params)
    assert logits.shape == (8, action_dim) and probs.shape == (8, action_dim)
    assert jnp.allclose(logits, ref_logits, atol=5e-4, rtol=1e-3)
    assert jnp.allclose(probs, ref_probs, atol=5e-4, rtol=1e-3)
    assert jnp.allclose(jnp.sum(probs, axis=-1), 1.0, atol=1e-5)

    # Case 2: ragged batch exercising batch padding + a multi-step grid
    # (grid=(2,) -> both TensorCores get a tile on v7x).
    x_big = jax.random.normal(k_x2, (20, state_dim), dtype=jnp.float32)
    logits2, probs2 = actor_forward(x_big, padded_params, a_dim, tile_batch=16)
    jax.block_until_ready((logits2, probs2))
    ref_logits2, ref_probs2 = actor_reference(x_big, raw_params)
    assert logits2.shape == (20, action_dim) and probs2.shape == (20, action_dim)
    assert jnp.allclose(logits2, ref_logits2, atol=5e-4, rtol=1e-3)
    assert jnp.allclose(probs2, ref_probs2, atol=5e-4, rtol=1e-3)
    assert jnp.allclose(jnp.sum(probs2, axis=-1), 1.0, atol=1e-5)

    print("KERNEL_OK")
</pallas_src>

<mosaic_0001>
module attributes {stable_mosaic.version = 11 : i64} {
  func.func @actor_kernel(%arg0: i32, %arg1: memref<8x16xf32, #tpu.memory_space<vmem>>, %arg2: memref<16x64xf32, #tpu.memory_space<vmem>>, %arg3: memref<1x64xf32, #tpu.memory_space<vmem>>, %arg4: memref<64x64xf32, #tpu.memory_space<vmem>>, %arg5: memref<1x64xf32, #tpu.memory_space<vmem>>, %arg6: memref<64x128xf32, #tpu.memory_space<vmem>>, %arg7: memref<1x128xf32, #tpu.memory_space<vmem>>, %arg8: memref<8x128xf32, #tpu.memory_space<vmem>>) attributes {dimension_semantics = [#tpu.dimension_semantics<parallel>], iteration_bounds = array<i64: 1>, scalar_prefetch = 0 : i64, scratch_operands = 0 : i64, tpu.core_type = #tpu.core_type<tc>, window_params = [{transform_indices = @transform_0, window_bounds = array<i64: 8, 16>}, {pipeline_mode = #tpu.pipeline_mode<synchronous>, transform_indices = @transform_1, window_bounds = array<i64: 16, 64>}, {pipeline_mode = #tpu.pipeline_mode<synchronous>, transform_indices = @transform_2, window_bounds = array<i64: 1, 64>}, {pipeline_mode = #tpu.pipeline_mode<synchronous>, transform_indices = @transform_3, window_bounds = array<i64: 64, 64>}, {pipeline_mode = #tpu.pipeline_mode<synchronous>, transform_indices = @transform_4, window_bounds = array<i64: 1, 64>}, {pipeline_mode = #tpu.pipeline_mode<synchronous>, transform_indices = @transform_5, window_bounds = array<i64: 64, 128>}, {pipeline_mode = #tpu.pipeline_mode<synchronous>, transform_indices = @transform_6, window_bounds = array<i64: 1, 128>}, {transform_indices = @transform_7, window_bounds = array<i64: 8, 128>}]} {
    %c0 = arith.constant 0 : index
    %c0_0 = arith.constant 0 : index
    %0 = vector.load %arg1[%c0, %c0_0] : memref<8x16xf32, #tpu.memory_space<vmem>>, vector<8x16xf32>
    %c0_1 = arith.constant 0 : index
    %c0_2 = arith.constant 0 : index
    %1 = vector.load %arg2[%c0_1, %c0_2] : memref<16x64xf32, #tpu.memory_space<vmem>>, vector<16x64xf32>
    %cst = arith.constant dense<0.000000e+00> : vector<8x64xf32>
    %2 = tpu.matmul %0, %1, %cst {dimension_numbers = #tpu.dot_dimension_numbers<[1], [0], [0], [1], [0, 0, 1, 1], [], []>} : vector<8x16xf32>, vector<16x64xf32>, vector<8x64xf32> -> vector<8x64xf32>
    %c0_3 = arith.constant 0 : index
    %c0_4 = arith.constant 0 : index
    %3 = vector.load %arg3[%c0_3, %c0_4] : memref<1x64xf32, #tpu.memory_space<vmem>>, vector<1x64xf32>
    %4 = vector.broadcast %3 : vector<1x64xf32> to vector<8x64xf32>
    %5 = arith.addf %2, %4 : vector<8x64xf32>
    %6 = math.tanh %5 : vector<8x64xf32>
    %c0_5 = arith.constant 0 : index
    %c0_6 = arith.constant 0 : index
    %7 = vector.load %arg4[%c0_5, %c0_6] : memref<64x64xf32, #tpu.memory_space<vmem>>, vector<64x64xf32>
    %cst_7 = arith.constant dense<0.000000e+00> : vector<8x64xf32>
    %8 = tpu.matmul %6, %7, %cst_7 {dimension_numbers = #tpu.dot_dimension_numbers<[1], [0], [0], [1], [0, 0, 1, 1], [], []>} : vector<8x64xf32>, vector<64x64xf32>, vector<8x64xf32> -> vector<8x64xf32>
    %c0_8 = arith.constant 0 : index
    %c0_9 = arith.constant 0 : index
    %9 = vector.load %arg5[%c0_8, %c0_9] : memref<1x64xf32, #tpu.memory_space<vmem>>, vector<1x64xf32>
    %10 = vector.broadcast %9 : vector<1x64xf32> to vector<8x64xf32>
    %11 = arith.addf %8, %10 : vector<8x64xf32>
    %12 = math.tanh %11 : vector<8x64xf32>
    %c0_10 = arith.constant 0 : index
    %c0_11 = arith.constant 0 : index
    %13 = vector.load %arg6[%c0_10, %c0_11] : memref<64x128xf32, #tpu.memory_space<vmem>>, vector<64x128xf32>
    %cst_12 = arith.constant dense<0.000000e+00> : vector<8x128xf32>
    %14 = tpu.matmul %12, %13, %cst_12 {dimension_numbers = #tpu.dot_dimension_numbers<[1], [0], [0], [1], [0, 0, 1, 1], [], []>} : vector<8x64xf32>, vector<64x128xf32>, vector<8x128xf32> -> vector<8x128xf32>
    %c0_13 = arith.constant 0 : index
    %c0_14 = arith.constant 0 : index
    %15 = vector.load %arg7[%c0_13, %c0_14] : memref<1x128xf32, #tpu.memory_space<vmem>>, vector<1x128xf32>
    %16 = vector.broadcast %15 : vector<1x128xf32> to vector<8x128xf32>
    %17 = arith.addf %14, %16 : vector<8x128xf32>
    %18 = tpu.iota {dimensions = array<i32: 1>} : vector<8x128xi32>
    %c64_i32 = arith.constant 64 : i32
    %19 = vector.broadcast %c64_i32 : i32 to vector<8x128xi32>
    %20 = arith.cmpi sge, %18, %19 : vector<8x128xi32>
    %c68_i32 = arith.constant 68 : i32
    %21 = vector.broadcast %c68_i32 : i32 to vector<8x128xi32>
    %22 = arith.cmpi slt, %18, %21 : vector<8x128xi32>
    %23 = arith.andi %20, %22 : vector<8x128xi1>
    %cst_15 = arith.constant 0xFF800000 : f32
    %24 = vector.broadcast %cst_15 : f32 to vector<8x128xf32>
    %25 = arith.select %23, %17, %24 : vector<8x128xi1>, vector<8x128xf32>
    %cst_16 = arith.constant dense<0xFF800000> : vector<8xf32>
    %26 = vector.multi_reduction <maximumf>, %25, %cst_16 [1] : vector<8x128xf32> to vector<8xf32>
    %27 = vector.shape_cast %26 : vector<8xf32> to vector<8x1xf32>
    %28 = vector.broadcast %27 : vector<8x1xf32> to vector<8x128xf32>
    %29 = arith.subf %25, %28 : vector<8x128xf32>
    %30 = math.exp %29 : vector<8x128xf32>
    %cst_17 = arith.constant 0.000000e+00 : f32
    %31 = vector.broadcast %cst_17 : f32 to vector<8x128xf32>
    %32 = arith.select %23, %30, %31 : vector<8x128xi1>, vector<8x128xf32>
    %cst_18 = arith.constant dense<0.000000e+00> : vector<8xf32>
    %33 = vector.multi_reduction <add>, %32, %cst_18 [1] : vector<8x128xf32> to vector<8xf32>
    %34 = vector.shape_cast %33 : vector<8xf32> to vector<8x1xf32>
    %35 = vector.broadcast %34 : vector<8x1xf32> to vector<8x128xf32>
    %36 = arith.divf %32, %35 : vector<8x128xf32>
    %c64_i32_19 = arith.constant 64 : i32
    %37 = vector.broadcast %c64_i32_19 : i32 to vector<8x128xi32>
    %38 = arith.cmpi slt, %18, %37 : vector<8x128xi32>
    %39 = arith.select %38, %17, %36 : vector<8x128xi1>, vector<8x128xf32>
    %c0_20 = arith.constant 0 : index
    %c0_21 = arith.constant 0 : index
    %40 = vector.load %arg8[%c0_20, %c0_21] : memref<8x128xf32, #tpu.memory_space<vmem>>, vector<8x128xf32>
    tpu.vector_store %arg8[%c0_20, %c0_21], %39 {strides = array<i32>} : memref<8x128xf32, #tpu.memory_space<vmem>>, vector<8x128xf32>,
    return
  }
  func.func @transform_0(%arg0: i32) -> (i32, i32) {
    %c0_i32 = arith.constant 0 : i32
    %c0_i32_0 = arith.constant 0 : i32
    return %arg0, %c0_i32 : i32, i32
  }
  func.func @transform_1(%arg0: i32) -> (i32, i32) {
    %c0_i32 = arith.constant 0 : i32
    %c0_i32_0 = arith.constant 0 : i32
    %c0_i32_1 = arith.constant 0 : i32
    return %c0_i32, %c0_i32_0 : i32, i32
  }
  func.func @transform_2(%arg0: i32) -> (i32, i32) {
    %c0_i32 = arith.constant 0 : i32
    %c0_i32_0 = arith.constant 0 : i32
    %c0_i32_1 = arith.constant 0 : i32
    return %c0_i32, %c0_i32_0 : i32, i32
  }
  func.func @transform_3(%arg0: i32) -> (i32, i32) {
    %c0_i32 = arith.constant 0 : i32
    %c0_i32_0 = arith.constant 0 : i32
    %c0_i32_1 = arith.constant 0 : i32
    return %c0_i32, %c0_i32_0 : i32, i32
  }
  func.func @transform_4(%arg0: i32) -> (i32, i32) {
    %c0_i32 = arith.constant 0 : i32
    %c0_i32_0 = arith.constant 0 : i32
    %c0_i32_1 = arith.constant 0 : i32
    return %c0_i32, %c0_i32_0 : i32, i32
  }
  func.func @transform_5(%arg0: i32) -> (i32, i32) {
    %c0_i32 = arith.constant 0 : i32
    %c0_i32_0 = arith.constant 0 : i32
    %c0_i32_1 = arith.constant 0 : i32
    return %c0_i32, %c0_i32_0 : i32, i32
  }
  func.func @transform_6(%arg0: i32) -> (i32, i32) {
    %c0_i32 = arith.constant 0 : i32
    %c0_i32_0 = arith.constant 0 : i32
    %c0_i32_1 = arith.constant 0 : i32
    return %c0_i32, %c0_i32_0 : i32, i32
  }
  func.func @transform_7(%arg0: i32) -> (i32, i32) {
    %c0_i32 = arith.constant 0 : i32
    %c0_i32_0 = arith.constant 0 : i32
    return %arg0, %c0_i32 : i32, i32
  }
}

</mosaic_0001>

<bundles_post_ra>
// kernel: tpu_custom_call.1
= control target key start
LH: loop header
LB: loop body
LE: loop exit
PB: predicated region body
PF: predicated region fallthrough
CT: control target
= control target key end

     0   :  { %12 = vsyncpa [#allocation3], 0  ;;  %s747_s0 = inlined_call_operand.hbm [shape: f32[8,16], index: 0, kind: input, shape index: {}]   ;;  %s748_s1 = inlined_call_operand.hbm [shape: f32[16,64], index: 1, kind: input, shape index: {}]   ;;  %s749_s2 = inlined_call_operand.vmem [shape: f32[1,64], index: 2, kind: input, shape index: {}]   ;;  %s750_s3 = inlined_call_operand.hbm [shape: f32[64,64], index: 3, kind: input, shape index: {}]   ;;  %s751_s4 = inlined_call_operand.vmem [shape: f32[1,64], index: 4, kind: input, shape index: {}]   ;;  %s752_s5 = inlined_call_operand.hbm [shape: f32[64,128], index: 5, kind: input, shape index: {}]   ;;  %s753_s6 = inlined_call_operand.vmem [shape: f32[1,128], index: 6, kind: input, shape index: {}]   ;;  %s754_s7 = inlined_call_operand.hbm [shape: f32[8,128], index: 7, kind: output, shape index: {}]  }
   0x1   :  { %13 = vsyncpa [#allocation6], 0 }
   0x2   :  { %14 = vsyncpa [#allocation9], 0 }
   0x3   :  { %15 = vsyncpa [#allocation4], 0  ;;  %s614_s24 = smov [#allocation5]   ;;  %s496_s28 = scalar_lea.hbm %s748_s1, 256 }
   0x4   :  { %s31_s25 = sshll.u32 %s614_s24, 4  ;;  %p497_p0 = scmp.ne.s32.totalorder %s748_s1, %s496_s28  ;;  %s32_s25 = int_to_ptr.vmem [resolvable:$true] %s31_s25 }
   0x5   :  { %p500_p1 = scmp.lt.u32.totalorder %s496_s28, %s748_s1 }
   0x7   :  { %p502_p2 = pnand %p500_p1, %p497_p0 }
   0x9   :  { %505 = shalt.err (!%p502_p2)
}
   0xa   :  { %s506_s10 = scalar_lea.vmem %s32_s25, 256  ;;  %p511_p4 = scmp.lt.s32.totalorder %s32_s25, %s32_s25 }
   0xb   :  { %p507_p3 = scmp.ne.s32.totalorder %s32_s25, %s506_s10  ;;  %p512_p5 = scmp.lt.s32.totalorder %s506_s10, %s506_s10 }
   0xd   :  { %p513_p6 = por %p512_p5, %p511_p4 }
   0xf   :  { %p514_p7 = pnand %p513_p6, %p507_p3 }
  0x11   :  { %517 = shalt.err (!%p514_p7)
}
  0x12   :  { %s615_s11 = smov 128   ;;  %s616_s12 = smov 8  }
  0x13   :  { %37 = dma.hbm_to_vmem [thread:$0]  %s748_s1, 256, %s32_s25, [#allocation6], %s615_s11, %s615_s11, %s616_s12  }
  0x14   :  { %s617_s15 = smov [#allocation2]   ;;  %s618_s17 = smov [#allocation7]  }
  0x15   :  { %s22_s16 = sshll.u32 %s617_s15, 4  ;;  %s45_s18 = sshll.u32 %s618_s17, 4  ;;  %s23_s16 = int_to_ptr.vmem [resolvable:$true] %s22_s16  ;;  %s46_s18 = int_to_ptr.vmem [resolvable:$true] %s45_s18 }
  0x16   :  { %s518_s21 = scalar_lea.hbm %s747_s0, 128 }
  0x17   :  { %p519_p8 = scmp.ne.s32.totalorder %s747_s0, %s518_s21  ;;  %p522_p9 = scmp.lt.u32.totalorder %s518_s21, %s747_s0 }
  0x19   :  { %p524_p10 = pnand %p522_p9, %p519_p8 }
  0x1b   :  { %527 = shalt.err (!%p524_p10)
}
  0x1c   :  { %s528_s1 = scalar_lea.vmem %s23_s16, 128  ;;  %p533_p12 = scmp.lt.s32.totalorder %s23_s16, %s23_s16 }
  0x1d   :  { %p529_p11 = scmp.ne.s32.totalorder %s23_s16, %s528_s1  ;;  %p534_p13 = scmp.lt.s32.totalorder %s528_s1, %s528_s1 }
  0x1f   :  { %p535_p0 = por %p534_p13, %p533_p12 }
  0x21   :  { %p536_p1 = pnand %p535_p0, %p529_p11 }
  0x23   :  { %539 = shalt.err (!%p536_p1)
}
  0x24   :  { %25 = dma.hbm_to_vmem [thread:$0]  %s747_s0, 128, %s23_s16, [#allocation3]  }
  0x25   :  { %s540_s30 = scalar_lea.hbm %s750_s3, 1024 }
  0x26   :  { %p541_p2 = scmp.ne.s32.totalorder %s750_s3, %s540_s30  ;;  %p544_p3 = scmp.lt.u32.totalorder %s540_s30, %s750_s3 }
  0x28   :  { %p546_p4 = pnand %p544_p3, %p541_p2 }
  0x2a   :  { %549 = shalt.err (!%p546_p4)
}
  0x2b   :  { %s550_s14 = scalar_lea.vmem %s46_s18, 1024  ;;  %p555_p6 = scmp.lt.s32.totalorder %s46_s18, %s46_s18 }
  0x2c   :  { %p551_p5 = scmp.ne.s32.totalorder %s46_s18, %s550_s14  ;;  %p556_p7 = scmp.lt.s32.totalorder %s550_s14, %s550_s14 }
  0x2e   :  { %p557_p8 = por %p556_p7, %p555_p6 }
  0x30   :  { %p558_p9 = pnand %p557_p8, %p551_p5 }
  0x32   :  { %561 = shalt.err (!%p558_p9)
}
  0x33   :  { %51 = dma.hbm_to_vmem [thread:$0]  %s750_s3, 1024, %s46_s18, [#allocation6], %s615_s11, %s615_s11, %s616_s12  }
  0x34   :  { %s619_s16 = smov [#allocation8]   ;;  %s562_s21 = scalar_lea.hbm %s752_s5, 1024 }
  0x35   :  { %s59_s17 = sshll.u32 %s619_s16, 4  ;;  %p563_p10 = scmp.ne.s32.totalorder %s752_s5, %s562_s21  ;;  %s60_s17 = int_to_ptr.vmem [resolvable:$true] %s59_s17 }
  0x36   :  { %p566_p11 = scmp.lt.u32.totalorder %s562_s21, %s752_s5 }
  0x38   :  { %p568_p12 = pnand %p566_p11, %p563_p10 }
  0x3a   :  { %571 = shalt.err (!%p568_p12)
}
  0x3b   :  { %s572_s1 = scalar_lea.vmem %s60_s17, 1024  ;;  %p577_p0 = scmp.lt.s32.totalorder %s60_s17, %s60_s17 }
  0x3c   :  { %p573_p13 = scmp.ne.s32.totalorder %s60_s17, %s572_s1  ;;  %p578_p1 = scmp.lt.s32.totalorder %s572_s1, %s572_s1 }
  0x3e   :  { %p579_p2 = por %p578_p1, %p577_p0 }
  0x40   :  { %p580_p3 = pnand %p579_p2, %p573_p13 }
  0x42   :  { %583 = shalt.err (!%p580_p3)
}
  0x43   :  { %65 = dma.hbm_to_vmem [thread:$0]  %s752_s5, 1024, %s60_s17, [#allocation9], %s615_s11, %s615_s11, %s616_s12  }
  0x44   :  { %606 = dma.done.wait [#allocation3], 128  }
  0x45   :  { %607 = vsyncadd [#allocation3], 4294967168 }
  0x46   :  { %608 = dma.done.wait [#allocation6], 1280  }
  0x47   :  { %609 = vsyncadd [#allocation6], 4294966016 }
  0x48   :  { %610 = dma.done.wait [#allocation9], 1024  }
  0x49   :  { %611 = vsyncadd [#allocation9], 4294966272  ;;  %v620_v0 = vmov 0.0|0.0   ;;  %vm621_vm0 = vmmov 0   ;;  %v622_v1 = vmov 0.0   ;;  %v81_v2 = vld [vmem:[#allocation5] sm:$0xff]  ;;  %v343_v40 = vlaneseq }
  0x4a   :  { %451 = vmatprep.subr.bf16.mxu0 %v620_v0  ;;  %410 = vmatprep.mubr.msk.f32.mxu0 %vm621_vm0, %v622_v1  ;;  %v82_v3 = vld [vmem:[#allocation5 + $0x8] sm:$0xff]  ;;  %v165_v5 = vld [vmem:[#allocation7] sm:$0xff]  ;;  %v166_v6 = vld [vmem:[#allocation7 + $0x8] sm:$0xff]  ;;  %vm90_vm1 = vcmask 130048   ;;  %vm180_vm2 = vcmask 523264  }
  0x4b   :  { %454 = vmatprep.subr.bf16.mxu1 %v620_v0  ;;  %429 = vmatprep.mubr.msk.f32.mxu1 %vm621_vm0, %v622_v1  ;;  %v452_v4 = vpack.c.bf16 %v82_v3, %v81_v2  ;;  %v455_v7 = vpack.c.bf16 %v166_v6, %v165_v5  ;;  %v80_v8 = vld [vmem:[#allocation2] sm:$0xff]  ;;  %v167_v9 = vld [vmem:[#allocation7 + $0x10] sm:$0xff]  ;;  %v168_v10 = vld [vmem:[#allocation7 + $0x18] sm:$0xff]  ;;  %v344_v41 = vand.u32 127, %v343_v40 }
  0x4c   :  { %v458_v11 = vpack.c.bf16 %v168_v10, %v167_v9  ;;  %v169_v12 = vld [vmem:[#allocation7 + $0x20] sm:$0xff]  ;;  %v170_v13 = vld [vmem:[#allocation7 + $0x28] sm:$0xff]  ;;  %v171_v15 = vld [vmem:[#allocation7 + $0x30] sm:$0xff] }
  0x4d   :  { %453 = vmatpush3.bf16.msra.mxu0 %v452_v4  ;;  %456 = vmatpush3.bf16.msra.mxu1 %v455_v7  ;;  %v461_v14 = vpack.c.bf16 %v170_v13, %v169_v12  ;;  %v172_v16 = vld [vmem:[#allocation7 + $0x38] sm:$0xff]  ;;  %v255_v18 = vld [vmem:[#allocation8] sm:$0xff]  ;;  %v256_v19 = vld [vmem:[#allocation8 + $0x8] sm:$0xff]  ;;  %vm345_vm3 = vcmp.ge.s32.totalorder %v344_v41, 64  ;;  %vm346_vm4 = vcmp.lt.s32.totalorder %v344_v41, 68  ;;  %vm359_vm6 = vcmp.lt.s32.totalorder %v344_v41, 64 }
  0x4e   :  { %466 = vmatprep.subr.bf16.mxu0 %v620_v0  ;;  %457 = vmatprep.subr.bf16.mxu1 %v620_v0  ;;  %v464_v17 = vpack.c.bf16 %v172_v16, %v171_v15  ;;  %v467_v20 = vpack.c.bf16 %v256_v19, %v255_v18  ;;  %v379_v21 = vld [vmem:[%s749_s2] ss:$0 sm:$0xff]  ;;  %v257_v26 = vld [vmem:[#allocation8 + $0x10] sm:$0xff]  ;;  %v258_v27 = vld [vmem:[#allocation8 + $0x18] sm:$0xff] }
  0x4f   :  { %v470_v28 = vpack.c.bf16 %v258_v27, %v257_v26  ;;  %v259_v29 = vld [vmem:[#allocation8 + $0x20] sm:$0xff]  ;;  %v260_v30 = vld [vmem:[#allocation8 + $0x28] sm:$0xff]  ;;  %v261_v32 = vld [vmem:[#allocation8 + $0x30] sm:$0xff] }
  0x50   :  { %411 = vmatmul.mubr.msk.f32.vlgmr.msra.gmra.mrb[0].mxu0 %vm90_vm1, %v80_v8  ;;  %v473_v31 = vpack.c.bf16 %v260_v30, %v259_v29  ;;  %v262_v33 = vld [vmem:[#allocation8 + $0x38] sm:$0xff]  ;;  %v381_v35 = vld [vmem:[%s751_s4] ss:$0 sm:$0xff]  ;;  %vm347_vm5 = vmand %vm345_vm3, %vm346_vm4  ;;  %s623_s4 = smov [#allocation10]  }
  0x51   :  { %448 = vmatprep.mubr.msk.f32.mxu0 %vm621_vm0, %v622_v1  ;;  %459 = vmatpush3.bf16.msra.mxu1 %v458_v11  ;;  %v476_v34 = vpack.c.bf16 %v262_v33, %v261_v32  ;;  %v383_v42 = vld [vmem:[%s753_s6] ss:$0 sm:$0xff]  ;;  %s368_s28 = sshll.u32 %s623_s4, 4  ;;  %s369_s28 = int_to_ptr.vmem [resolvable:$true] %s368_s28 }
  0x52   :  { %460 = vmatprep.subr.bf16.mxu1 %v620_v0  ;;  %468 = vmatpush3.bf16.msra.mxu0 %v467_v20  ;;  %s584_s6 = scalar_lea.vmem %s369_s28, 128  ;;  %p589_p5 = scmp.lt.s32.totalorder %s369_s28, %s369_s28 }
  0x53   :  { %469 = vmatprep.subr.bf16.mxu0 %v620_v0  ;;  %p585_p4 = scmp.ne.s32.totalorder %s369_s28, %s584_s6  ;;  %p590_p6 = scmp.lt.s32.totalorder %s584_s6, %s584_s6 }
  0x55   :  { %462 = vmatpush3.bf16.msra.mxu1 %v461_v14  ;;  %p591_p7 = por %p590_p6, %p589_p5 }
  0x56   :  { %463 = vmatprep.subr.bf16.mxu1 %v620_v0  ;;  %471 = vmatpush3.bf16.msra.mxu0 %v470_v28 }
  0x57   :  { %472 = vmatprep.subr.bf16.mxu0 %v620_v0  ;;  %p592_p8 = pnand %p591_p7, %p585_p4 }
  0x59   :  { %465 = vmatpush3.bf16.msra.mxu1 %v464_v17 }
  0x5a   :  { %474 = vmatpush3.bf16.msra.mxu0 %v473_v31 }
  0x5b   :  { %475 = vmatprep.subr.bf16.mxu0 %v620_v0 }
  0x5e   :  { %477 = vmatpush3.bf16.msra.mxu0 %v476_v34 }
 0x123   :  { %v160_v22 = vpop.f32.mrb[0].mxu0 }
 0x124   :  { %v161_v23 = vadd.f32 %v379_v21, %v160_v22  ;;  %v412_v24 = vpop.f32.mrb[1].mxu0 }
 0x126   :  { %488 = vtanh.f32 %v161_v23 }
 0x130   :  { %v489_v25 = vpop.eup %488 }
 0x131   :  { %430 = vmatmul.mubr.msk.f32.vlgmr.msra.gmra.mrb[0].mxu1 %vm180_vm2, %v489_v25 }
 0x204   :  { %v250_v36 = vpop.f32.mrb[0].mxu1 }
 0x205   :  { %v251_v37 = vadd.f32 %v381_v35, %v250_v36  ;;  %v431_v38 = vpop.f32.mrb[1].mxu1 }
 0x207   :  { %490 = vtanh.f32 %v251_v37 }
 0x211   :  { %v491_v39 = vpop.eup %490 }
 0x212   :  { %449 = vmatmul.mubr.msk.f32.vlgmr.msra.gmra.mrb[2].mxu0 %vm180_vm2, %v491_v39 }
 0x2e5   :  { %v339_v43 = vpop.f32.mrb[2].mxu0 }
 0x2e6   :  { %v340_v44 = vadd.f32 %v383_v42, %v339_v43  ;;  %v450_v45 = vpop.f32.mrb[3].mxu0 }
 0x2e8   :  { %v348_v46 = vsel %vm347_vm5, %v340_v44, -inf }
 0x2e9   :  { %349 = vmax.xlane.f32.xlu0 %v348_v46 }
 0x376   :  { %v350_v47 = vpop.xlane.xlu0 %349 }
 0x377   :  { %v351_v48 = vsub.f32 %v348_v46, %v350_v47 }
 0x379   :  { %v352_v49 = vmul.f32 1.442695, %v351_v48 }
 0x37b   :  { %492 = vpow2.f32 %v352_v49 }
 0x385   :  { %v493_v50 = vpop.eup %492 }
 0x386   :  { %v354_v51 = vsel %vm347_vm5, %v493_v50, 0.0 }
 0x387   :  { %355 = vadd.xlane.f32.xlu0 %v354_v51 }
 0x414   :  { %v356_v52 = vpop.xlane.xlu0 %355 }
 0x415   :  { %494 = vrcp.f32 %v356_v52 }
 0x41f   :  { %v495_v53 = vpop.eup %494 }
 0x420   :  { %v358_v54 = vmul.f32 %v495_v53, %v354_v51 }
 0x422   :  { %v360_v55 = vsel %vm359_vm6, %v340_v44, %v358_v54 }
 0x423   :  { %361 = vst [vmem:[#allocation10] sm:$0xff] %v360_v55 }
 0x424   :  { %595 = shalt.err (!%p592_p8)
}
 0x425   :  { %s596_s8 = scalar_lea.hbm %s754_s7, 128 }
 0x426   :  { %p597_p9 = scmp.ne.s32.totalorder %s754_s7, %s596_s8  ;;  %p600_p10 = scmp.lt.u32.totalorder %s596_s8, %s754_s7 }
 0x428   :  { %p602_p11 = pnand %p600_p10, %p597_p9 }
 0x42a   :  { %605 = shalt.err (!%p602_p11)
}
 0x42b   :  { %371 = dma.vmem_to_hbm [thread:$0]  %s369_s28, 128, %s754_s7, [#allocation4]  }
 0x42c   :  { %612 = dma.done.wait [#allocation4], 128  }
 0x42d   :  { %613 = vsyncadd [#allocation4], 4294967168 }
 0x42e   :  { %375 = vsyncpa [#allocation3], 1 }
 0x42f   :  { %376 = vsyncpa [#allocation6], 1 }
 0x430   :  { %377 = vsyncpa [#allocation9], 1 }
 0x431   :  { %378 = vsyncpa [#allocation4], 1 }

</bundles_post_ra>
